<compile_context>
chip_gen: v6e
topology: v6e:2x2x1
jax: 0.10.0
libtpu: 0.0.40
codegen_flags: <defaults>
</compile_context>

<pallas_src>
import functools

import jax
import jax.numpy as jnp
from jax.experimental import pallas as pl
from jax.experimental.pallas import tpu as pltpu

H = 32    # hidden size of the synthetic inner model (linear LM head)
V = 128   # vocab size (multiple of 128 -> lane-dense logits)

MAX_TQ = 2048        # row-tile cap: ~2.5 MiB/step double-buffered, fits v7x scoped VMEM
MIN_GRID_STEPS = 8   # occupancy target: keep both v7x TCs busy, give pipeline depth


def _round_down8(n):
    return (n // 8) * 8


def _choose_tq(t_rows, batch):
    """Row tile along the (output) time axis.

    Guarantees legal BlockSpecs:
      * t_rows < 8  -> tq == t_rows (blocks equal the full time dim; the caller
                       trims x so its time dim is also t_rows).
      * t_rows >= 8 -> tq is a multiple of 8 with tq <= t_rows, so only standard
                       boundary partial blocks occur (reads padded, writes masked).
    Shrinks tq until there are >= MIN_GRID_STEPS grid steps when possible.
    """
    if t_rows < 8:
        return t_rows
    tq = min(MAX_TQ, _round_down8(t_rows))
    while tq > 8 and batch * pl.cdiv(t_rows, tq) < MIN_GRID_STEPS:
        tq = max(8, _round_down8(tq // 2))
    return tq


# -------------------- fused LM-head + cross-entropy kernel -------------------
def _lmhead_ce_kernel(x_ref, w_ref, b_ref, t_ref, logits_ref, part_ref, *,
                      t_out, tq):
    # x:(tq,H) f32  w:(H,V) f32  b:(1,V) f32  t:(tq,1) i32
    # logits out:(tq,V) f32   part out:(1,128) f32 (this tile's loss sum)
    j = pl.program_id(1)

    logits = jnp.dot(x_ref[...], w_ref[...],
                     preferred_element_type=jnp.float32,
                     precision=jax.lax.Precision.HIGHEST) + b_ref[...]
    logits_ref[...] = logits          # written once; never read back from HBM

    # Cross-entropy on the tile while it is resident in VMEM.
    t = t_ref[...]                                               # (tq, 1)
    m = jnp.max(logits, axis=-1, keepdims=True)                  # (tq, 1)
    ex = jnp.exp(logits - m)                                     # EUP
    lse = jnp.log(jnp.sum(ex, axis=-1, keepdims=True)) + m       # (tq, 1)
    col = jax.lax.broadcasted_iota(jnp.int32, logits.shape, 1)   # (tq, V)
    tgt = jnp.sum(jnp.where(col == t, logits, 0.0),
                  axis=-1, keepdims=True)                        # (tq, 1)
    # Mask (a) boundary rows beyond the valid output length (partial tail tile,
    # garbage reads) and (b) ignored targets (negative ids, e.g. -100).
    row = j * tq + jax.lax.broadcasted_iota(jnp.int32, (tq, 1), 0)
    valid = (row < t_out) & (t >= 0)
    per_row = jnp.where(valid, lse - tgt, 0.0)
    part_ref[...] = jnp.broadcast_to(jnp.sum(per_row), part_ref.shape)


def _lmhead_ce_call(x, w, b, t3, tq, t_out):
    B, T, h = x.shape
    v = w.shape[1]
    J = pl.cdiv(t_out, tq)
    kernel = functools.partial(_lmhead_ce_kernel, t_out=t_out, tq=tq)
    flops = 2 * B * J * tq * h * v
    bytes_accessed = ((B * T * h + h * v + v + B * t_out) * 4
                      + B * t_out * v * 4 + B * J * 128 * 4)
    return pl.pallas_call(
        kernel,
        out_shape=(
            jax.ShapeDtypeStruct((B, t_out, v), jnp.float32),     # logits
            jax.ShapeDtypeStruct((B, J, 1, 128), jnp.float32),    # loss partials
        ),
        grid=(B, J),
        in_specs=[
            pl.BlockSpec((None, tq, h), lambda bi, j: (bi, j, 0)),   # x tile
            pl.BlockSpec((h, v), lambda bi, j: (0, 0)),              # W (resident)
            pl.BlockSpec((1, v), lambda bi, j: (0, 0)),              # bias
            # TODO(synk): lane-dense targets ((B,1,T_out), block (1,1,tq)) would
            # shrink this operand's VMEM footprint ~128x on v7x; the (tq,1)
            # layout is kept for lowering robustness (<1 MiB/buffer at tq<=2048).
            pl.BlockSpec((None, tq, 1), lambda bi, j: (bi, j, 0)),   # targets
        ],
        out_specs=(
            pl.BlockSpec((None, tq, v), lambda bi, j: (bi, j, 0)),
            pl.BlockSpec((None, None, 1, 128), lambda bi, j: (bi, j, 0, 0)),
        ),
        compiler_params=pltpu.CompilerParams(
            dimension_semantics=("parallel", "parallel")),
        cost_estimate=pl.CostEstimate(
            flops=flops,
            transcendentals=B * t_out * v,
            bytes_accessed=bytes_accessed),
    )(x, w, b, t3)


# ------------------------ logits-only kernel (inference) ---------------------
def _lmhead_kernel(x_ref, w_ref, b_ref, logits_ref):
    logits_ref[...] = jnp.dot(x_ref[...], w_ref[...],
                              preferred_element_type=jnp.float32,
                              precision=jax.lax.Precision.HIGHEST) + b_ref[...]


def _lmhead_call(x, w, b, tq):
    B, T, h = x.shape
    v = w.shape[1]
    J = pl.cdiv(T, tq)
    return pl.pallas_call(
        _lmhead_kernel,
        out_shape=jax.ShapeDtypeStruct((B, T, v), jnp.float32),
        grid=(B, J),
        in_specs=[
            pl.BlockSpec((None, tq, h), lambda bi, j: (bi, j, 0)),
            pl.BlockSpec((h, v), lambda bi, j: (0, 0)),
            pl.BlockSpec((1, v), lambda bi, j: (0, 0)),
        ],
        out_specs=pl.BlockSpec((None, tq, v), lambda bi, j: (bi, j, 0)),
        compiler_params=pltpu.CompilerParams(
            dimension_semantics=("parallel", "parallel")),
        cost_estimate=pl.CostEstimate(
            flops=2 * B * J * tq * h * v,
            transcendentals=0,
            bytes_accessed=(B * T * h + h * v + v) * 4 + B * T * v * 4),
    )(x, w, b)


# -------------------------------- wrapped forward ----------------------------
@functools.partial(jax.jit, static_argnames=("shift_labels",))
def wrapped_forward(x, w, b, targets=None, shift_labels=False):
    """Mirrors WrappedModel.forward: returns (logits, loss).

    When shift_labels=True and targets are given, the returned logits are
    already the (B, T-1, V) sliced tensor, produced directly by the kernel's
    output BlockSpec (no extra HBM round trip).  targets < 0 (e.g. -100) are
    ignored, matching F.cross_entropy's ignore_index semantics.
    """
    B, T, _ = x.shape

    if targets is None:
        # Inference path: no CE work, no targets DMA, no partials writeback.
        tq = _choose_tq(T, B)
        return _lmhead_call(x, w, b, tq), None

    t = targets.astype(jnp.int32)
    if shift_labels:
        t_out = T - 1
        t_aligned = t[:, 1:]
    else:
        t_out = T
        t_aligned = t

    tq = _choose_tq(t_out, B)
    # Tiny-sequence fallback (t_out < 8): blocks must equal the full time dim,
    # so trim x's time dim to t_out as well (negligible: < 8 rows per batch).
    x_in = x if (t_out == T or t_out >= 8) else x[:, :t_out, :]

    logits, partials = _lmhead_ce_call(
        x_in, w, b, t_aligned.reshape(B, t_out, 1), tq, t_out)

    num_valid = jnp.sum(t_aligned >= 0).astype(jnp.float32)
    loss = jnp.sum(partials[:, :, 0, 0]) / num_valid
    return logits, loss


# ------------------------------------ demo -----------------------------------
if __name__ == "__main__":
    key = jax.random.PRNGKey(0)
    kx, kw, kt, kx2, kt2 = jax.random.split(key, 5)

    B, T = 2, 8
    x = jax.random.normal(kx, (B, T, H), dtype=jnp.float32)
    # Deterministic synthetic parameters for the inner "model" (linear LM head).
    w = 0.02 * jax.random.normal(kw, (H, V), dtype=jnp.float32)
    b = jnp.zeros((1, V), dtype=jnp.float32)
    targets = jax.random.randint(kt, (B, T), 0, V, dtype=jnp.int32)

    def ref_forward(xx, tt, shift):
        logits = jnp.einsum("bth,hv->btv", xx, w, precision="highest") + b[0]
        if tt is None:
            return logits, None
        if shift:
            logits, tt = logits[:, :-1, :], tt[:, 1:]
        lse = jax.nn.logsumexp(logits, axis=-1)
        tgt = jnp.take_along_axis(logits, tt[..., None], axis=-1)[..., 0]
        return logits, jnp.mean(lse - tgt)

    # 1) training path, shift_labels=True (tiny T_out=7 -> full-block path)
    logits, loss = wrapped_forward(x, w, b, targets=targets, shift_labels=True)
    jax.block_until_ready((logits, loss))
    r_logits, r_loss = ref_forward(x, targets, True)
    assert logits.shape == (B, T - 1, V) and loss.shape == ()
    assert jnp.allclose(logits, r_logits, atol=2e-3, rtol=2e-3)
    assert jnp.allclose(loss, r_loss, atol=2e-3, rtol=2e-3)

    # 2) training path, shift_labels=False
    logits, loss = wrapped_forward(x, w, b, targets=targets, shift_labels=False)
    r_logits, r_loss = ref_forward(x, targets, False)
    assert jnp.allclose(logits, r_logits, atol=2e-3, rtol=2e-3)
    assert jnp.allclose(loss, r_loss, atol=2e-3, rtol=2e-3)

    # 3) inference path (targets=None): logits-only kernel
    logits, loss = wrapped_forward(x, w, b)
    assert loss is None and logits.shape == (B, T, V)
    assert jnp.allclose(logits, ref_forward(x, None, False)[0], atol=2e-3, rtol=2e-3)

    # 4) larger tiled path exercising boundary partial blocks (T_out=95, tq=16)
    B2, T2 = 2, 96
    x2 = jax.random.normal(kx2, (B2, T2, H), dtype=jnp.float32)
    t2 = jax.random.randint(kt2, (B2, T2), 0, V, dtype=jnp.int32)
    logits2, loss2 = wrapped_forward(x2, w, b, targets=t2, shift_labels=True)
    jax.block_until_ready((logits2, loss2))
    r_logits2, r_loss2 = ref_forward(x2, t2, True)
    assert logits2.shape == (B2, T2 - 1, V)
    assert jnp.allclose(logits2, r_logits2, atol=2e-3, rtol=2e-3)
    assert jnp.allclose(loss2, r_loss2, atol=2e-3, rtol=2e-3)

    print("KERNEL_OK")
</pallas_src>

<mosaic_0001>
module attributes {stable_mosaic.version = 11 : i64} {
  func.func @_lmhead_ce_kernel(%arg0: i32, %arg1: i32, %arg2: memref<1x7x32xf32, #tpu.memory_space<vmem>>, %arg3: memref<32x128xf32, #tpu.memory_space<vmem>>, %arg4: memref<1x128xf32, #tpu.memory_space<vmem>>, %arg5: memref<1x7x1xi32, #tpu.memory_space<vmem>>, %arg6: memref<1x7x128xf32, #tpu.memory_space<vmem>>, %arg7: memref<1x1x1x128xf32, #tpu.memory_space<vmem>>) attributes {dimension_semantics = [#tpu.dimension_semantics<parallel>, #tpu.dimension_semantics<parallel>], iteration_bounds = array<i64: 2, 1>, scalar_prefetch = 0 : i64, scratch_operands = 0 : i64, tpu.core_type = #tpu.core_type<tc>, window_params = [{transform_indices = @transform_0, window_bounds = array<i64: 1, 7, 32>}, {pipeline_mode = #tpu.pipeline_mode<synchronous>, transform_indices = @transform_1, window_bounds = array<i64: 32, 128>}, {pipeline_mode = #tpu.pipeline_mode<synchronous>, transform_indices = @transform_2, window_bounds = array<i64: 1, 128>}, {transform_indices = @transform_3, window_bounds = array<i64: 1, 7, 1>}, {transform_indices = @transform_4, window_bounds = array<i64: 1, 7, 128>}, {transform_indices = @transform_5, window_bounds = array<i64: 1, 1, 1, 128>}]} {
    %c0 = arith.constant 0 : index
    %c0_0 = arith.constant 0 : index
    %c0_1 = arith.constant 0 : index
    %0 = vector.load %arg2[%c0, %c0_0, %c0_1] : memref<1x7x32xf32, #tpu.memory_space<vmem>>, vector<1x7x32xf32>
    %1 = vector.shape_cast %0 : vector<1x7x32xf32> to vector<7x32xf32>
    %c0_2 = arith.constant 0 : index
    %c0_3 = arith.constant 0 : index
    %2 = vector.load %arg3[%c0_2, %c0_3] : memref<32x128xf32, #tpu.memory_space<vmem>>, vector<32x128xf32>
    %cst = arith.constant dense<0.000000e+00> : vector<7x128xf32>
    %3 = tpu.matmul %1, %2, %cst {dimension_numbers = #tpu.dot_dimension_numbers<[1], [0], [0], [1], [0, 0, 1, 1], [], []>, precision = #tpu.contract_precision<fp32>} : vector<7x32xf32>, vector<32x128xf32>, vector<7x128xf32> -> vector<7x128xf32>
    %c0_4 = arith.constant 0 : index
    %c0_5 = arith.constant 0 : index
    %4 = vector.load %arg4[%c0_4, %c0_5] : memref<1x128xf32, #tpu.memory_space<vmem>>, vector<1x128xf32>
    %5 = vector.broadcast %4 : vector<1x128xf32> to vector<7x128xf32>
    %6 = arith.addf %3, %5 : vector<7x128xf32>
    %c0_6 = arith.constant 0 : index
    %c0_7 = arith.constant 0 : index
    %c0_8 = arith.constant 0 : index
    %7 = vector.load %arg6[%c0_6, %c0_7, %c0_8] : memref<1x7x128xf32, #tpu.memory_space<vmem>>, vector<1x7x128xf32>
    %8 = vector.shape_cast %7 : vector<1x7x128xf32> to vector<7x128xf32>
    %9 = vector.shape_cast %6 : vector<7x128xf32> to vector<1x7x128xf32>
    tpu.vector_store %arg6[%c0_6, %c0_7, %c0_8], %9 {strides = array<i32>} : memref<1x7x128xf32, #tpu.memory_space<vmem>>, vector<1x7x128xf32>,
    %c0_9 = arith.constant 0 : index
    %c0_10 = arith.constant 0 : index
    %c0_11 = arith.constant 0 : index
    %10 = vector.load %arg5[%c0_9, %c0_10, %c0_11] : memref<1x7x1xi32, #tpu.memory_space<vmem>>, vector<1x7x1xi32>
    %11 = vector.shape_cast %10 : vector<1x7x1xi32> to vector<7x1xi32>
    %cst_12 = arith.constant dense<0xFF800000> : vector<7xf32>
    %12 = vector.multi_reduction <maximumf>, %6, %cst_12 [1] : vector<7x128xf32> to vector<7xf32>
    %13 = vector.shape_cast %12 : vector<7xf32> to vector<7x1xf32>
    %14 = vector.broadcast %13 : vector<7x1xf32> to vector<7x128xf32>
    %15 = arith.subf %6, %14 : vector<7x128xf32>
    %16 = math.exp %15 : vector<7x128xf32>
    %cst_13 = arith.constant dense<0.000000e+00> : vector<7xf32>
    %17 = vector.multi_reduction <add>, %16, %cst_13 [1] : vector<7x128xf32> to vector<7xf32>
    %18 = vector.shape_cast %17 : vector<7xf32> to vector<7x1xf32>
    %19 = math.log %18 : vector<7x1xf32>
    %20 = arith.addf %19, %13 : vector<7x1xf32>
    %21 = tpu.iota {dimensions = array<i32: 1>} : vector<7x128xi32>
    %22 = vector.broadcast %11 : vector<7x1xi32> to vector<7x128xi32>
    %23 = arith.cmpi eq, %21, %22 : vector<7x128xi32>
    %cst_14 = arith.constant 0.000000e+00 : f32
    %24 = vector.broadcast %cst_14 : f32 to vector<7x128xf32>
    %25 = arith.select %23, %6, %24 : vector<7x128xi1>, vector<7x128xf32>
    %cst_15 = arith.constant dense<0.000000e+00> : vector<7xf32>
    %26 = vector.multi_reduction <add>, %25, %cst_15 [1] : vector<7x128xf32> to vector<7xf32>
    %27 = vector.shape_cast %26 : vector<7xf32> to vector<7x1xf32>
    %c7_i32 = arith.constant 7 : i32
    %28 = arith.muli %arg1, %c7_i32 : i32
    %29 = tpu.iota {dimensions = array<i32: 0>} : vector<7x1xi32>
    %30 = vector.broadcast %28 : i32 to vector<7x1xi32>
    %31 = arith.addi %30, %29 : vector<7x1xi32>
    %c7_i32_16 = arith.constant 7 : i32
    %32 = vector.broadcast %c7_i32_16 : i32 to vector<7x1xi32>
    %33 = arith.cmpi slt, %31, %32 : vector<7x1xi32>
    %c0_i32 = arith.constant 0 : i32
    %34 = vector.broadcast %c0_i32 : i32 to vector<7x1xi32>
    %35 = arith.cmpi sge, %11, %34 : vector<7x1xi32>
    %36 = arith.andi %33, %35 : vector<7x1xi1>
    %37 = arith.subf %20, %27 : vector<7x1xf32>
    %cst_17 = arith.constant 0.000000e+00 : f32
    %38 = vector.broadcast %cst_17 : f32 to vector<7x1xf32>
    %39 = arith.select %36, %37, %38 : vector<7x1xi1>, vector<7x1xf32>
    %40 = vector.shape_cast %39 : vector<7x1xf32> to vector<1x7x1xf32>
    %cst_18 = arith.constant dense<0.000000e+00> : vector<1xf32>
    %41 = vector.multi_reduction <add>, %40, %cst_18 [1, 2] : vector<1x7x1xf32> to vector<1xf32>
    %42 = vector.shape_cast %41 : vector<1xf32> to vector<1x1x1xf32>
    %43 = vector.extract %42[0, 0, 0] : f32 from vector<1x1x1xf32>
    %44 = vector.broadcast %43 : f32 to vector<1x128xf32>
    %c0_19 = arith.constant 0 : index
    %c0_20 = arith.constant 0 : index
    %c0_21 = arith.constant 0 : index
    %c0_22 = arith.constant 0 : index
    %45 = vector.load %arg7[%c0_19, %c0_20, %c0_21, %c0_22] : memref<1x1x1x128xf32, #tpu.memory_space<vmem>>, vector<1x1x1x128xf32>
    %46 = vector.shape_cast %45 : vector<1x1x1x128xf32> to vector<1x128xf32>
    %47 = vector.shape_cast %44 : vector<1x128xf32> to vector<1x1x1x128xf32>
    tpu.vector_store %arg7[%c0_19, %c0_20, %c0_21, %c0_22], %47 {strides = array<i32>} : memref<1x1x1x128xf32, #tpu.memory_space<vmem>>, vector<1x1x1x128xf32>,
    return
  }
  func.func @transform_0(%arg0: i32, %arg1: i32) -> (i32, i32, i32) {
    %c0_i32 = arith.constant 0 : i32
    %c0_i32_0 = arith.constant 0 : i32
    return %arg0, %arg1, %c0_i32 : i32, i32, i32
  }
  func.func @transform_1(%arg0: i32, %arg1: i32) -> (i32, i32) {
    %c0_i32 = arith.constant 0 : i32
    %c0_i32_0 = arith.constant 0 : i32
    %c0_i32_1 = arith.constant 0 : i32
    return %c0_i32, %c0_i32_0 : i32, i32
  }
  func.func @transform_2(%arg0: i32, %arg1: i32) -> (i32, i32) {
    %c0_i32 = arith.constant 0 : i32
    %c0_i32_0 = arith.constant 0 : i32
    %c0_i32_1 = arith.constant 0 : i32
    return %c0_i32, %c0_i32_0 : i32, i32
  }
  func.func @transform_3(%arg0: i32, %arg1: i32) -> (i32, i32, i32) {
    %c0_i32 = arith.constant 0 : i32
    %c0_i32_0 = arith.constant 0 : i32
    return %arg0, %arg1, %c0_i32 : i32, i32, i32
  }
  func.func @transform_4(%arg0: i32, %arg1: i32) -> (i32, i32, i32) {
    %c0_i32 = arith.constant 0 : i32
    %c0_i32_0 = arith.constant 0 : i32
    return %arg0, %arg1, %c0_i32 : i32, i32, i32
  }
  func.func @transform_5(%arg0: i32, %arg1: i32) -> (i32, i32, i32, i32) {
    %c0_i32 = arith.constant 0 : i32
    %c0_i32_0 = arith.constant 0 : i32
    %c0_i32_1 = arith.constant 0 : i32
    return %arg0, %arg1, %c0_i32, %c0_i32_0 : i32, i32, i32, i32
  }
}

</mosaic_0001>

<bundles_post_ra>
// kernel: wrapped_forward.1
= control target key start
LH: loop header
LB: loop body
LE: loop exit
PB: predicated region body
PF: predicated region fallthrough
CT: control target
= control target key end

     0   :  { %11 = vsyncpa [#allocation3], 0  ;;  %s1558_s0 = inlined_call_operand.hbm [shape: f32[2,7,32], index: 0, kind: input, shape index: {}]   ;;  %s1559_s1 = inlined_call_operand.vmem [shape: f32[32,128], index: 1, kind: input, shape index: {}]   ;;  %s1560_s2 = inlined_call_operand.hbm [shape: f32[1,128], index: 2, kind: input, shape index: {}]   ;;  %s1561_s3 = inlined_call_operand.vmem [shape: s32[2,7,1], index: 3, kind: input, shape index: {}]   ;;  %s1562_s4 = inlined_call_operand.vmem [shape: f32[2,7,128], index: 4, kind: output, shape index: {0}]   ;;  %s1563_s5 = inlined_call_operand.vmem [shape: f32[2,1,1,128], index: 5, kind: output, shape index: {1}]  }
   0x1   :  { %13 = vsyncpa [#allocation3 + $0x1], 0 }
   0x2   :  { %14 = vsyncpa [#allocation5], 0  ;;  %s1346_s18 = smov 0   ;;  %s1348_s19 = smov 0  }
   0x3   :  { %s1350_s20 = smov 0   ;;  %s1352_s21 = smov 0  }
   0x4   :  { %s1354_s22 = smov 0   ;;  %s1356_s23 = smov 0  }
   0x5 LB: > { %s1014_s24 = sadd.s32 4294967295, %s1309_s23   ;;  %p54_p0 = scmp.ne.s32.totalorder %s1293_s19, %s1289_s18  ;;  %s1309_s23 = sphi %s1356_s23, %s20_s23   ;;  %s1305_s22 = sphi %s1354_s22, %s1573_s22   ;;  %s1301_s21 = sphi %s1352_s21, %s1572_s21   ;;  %s1297_s20 = sphi %s1350_s20, %s1571_s20   ;;  %s1293_s19 = sphi %s1348_s19, %s1570_s19   ;;  %s1289_s18 = sphi %s1346_s18, %s1569_s18  }
   0x6   : > { %p1376_p1 = scmp.eq.s32.totalorder %s1014_s24, 0  ;;  %p1016_p2 = scmp.ge.s32.totalorder %s1309_s23, 1 }
   0x7   : > { %p191_p3 = scmp.lt.s32.totalorder %s1309_s23, 3  ;;  %s1311_s28 = smov [#allocation4]  }
   0x8   : > { %p1384_p4 = por %p1376_p1, %p54_p0  ;;  %s207_s29 = sshll.u32 %s1311_s28, 4  ;;  %s208_s29 = int_to_ptr.vmem [resolvable:$true] %s207_s29 }
   0x9   : > { %p1388_p5 = pnand %p1016_p2, %p191_p3  ;;  %s32_s6 = sadd.s32 1, %s1305_s22 }
   0xa   : > { %s41_s7 = sadd.s32 1, %s1297_s20  ;;  %p34_p8 = scmp.ge.s32.totalorder %s32_s6, 2 }
   0xb   : > { %p1133_p6 = pneg %p1388_p5  ;;  %s1212_s8 = scalar_lea.vmem %s208_s29, 16 }
   0xc   : > { %p1213_p10 = scmp.ne.s32.totalorder %s208_s29, %s1212_s8  ;;  %s1219_s9 = scalar_lea.vmem %s208_s29, 32 }
   0xd   : > { %p1396_p7 = pnand %p1133_p6, %p1376_p1  ;;  %p1220_p13 = scmp.lt.s32.totalorder %s208_s29, %s208_s29 }
   0xe   : > { %p1221_p0 = scmp.lt.s32.totalorder %s1219_s9, %s1212_s8 }
   0xf   : > { %p1203_p9 = pneg %p1396_p7 }
  0x10   : > { %p1222_p2 = por %p1221_p0, %p1220_p13 }
  0x11   : > { %p1215_p11 = pnand %p1213_p10, %p1203_p9 }
  0x13   : > { %p1216_p12 = pneg %p1215_p11 }
  0x15   : > { %p1223_p3 = pnand %p1222_p2, %p1216_p12 }
  0x17   : > { %1226 = shalt.err (!%p1223_p3)
}
  0x18   : > { %1136 = dma.hbm_to_vmem [thread:$0]  (!%p1396_p7), %s1560_s2, 16, %s208_s29, [#allocation5]  }
  0x19   : > { %s1575_s6 = smov (%p34_p8, %s32_s6), 0  ;;  %p48_p6 = scmp.ne.s32.totalorder %s1297_s20, %s1293_s19 }
  0x1a   : > { %p49_p9 = scmp.eq.s32.totalorder %s1309_s23, 0  ;;  %s36_s12 = ssub.s32 %s1305_s22, %s1575_s6 }
  0x1b   : > { %p1142_p10 = scmp.lt.s32.totalorder %s1309_s23, 2  ;;  %p39_p11 = scmp.eq.s32.totalorder %s36_s12, 0 }
  0x1c   : > { %p50_p12 = por %p49_p9, %p48_p6  ;;  %s218_s13 = sand.u32 1, %s1297_s20  }
  0x1d   : > { %s1020_s14 = sshll.u32 %s1305_s22, 7  ;;  %s1019_s16 = sshll.u32 %s218_s13, 3 }
  0x1e   : > { %s1420_s15 = scalar_select %p39_p11, %s1297_s20, %s41_s7  }
  0x1f   : > { %s228_s24 = scalar_lea.hbm %s1558_s0, %s1020_s14  ;;  %s222_s28 = scalar_lea.vmem [#allocation2], %s1019_s16 }
  0x20   : > { %s230_s29 = sshll.u32 %s222_s28, 4  ;;  %p1425_p7 = pnand %p1142_p10, %p50_p12  ;;  %s231_s29 = int_to_ptr.vmem [resolvable:$true] %s230_s29 }
  0x21   : > { %s219_s8 = scalar_lea.sflag [#allocation3], %s218_s13  ;;  %s1240_s9 = scalar_lea.vmem %s231_s29, 128 }
  0x22   : > { %p1229_p8 = pneg %p1425_p7  ;;  %p1241_p13 = scmp.ne.s32.totalorder %s231_s29, %s1240_s9 }
  0x23   : > { %s1312_s7 = smov [#allocation2]  }
  0x24   : > { %p1243_p0 = pnand %p1241_p13, %p1229_p8  ;;  %s1245_s10 = sshll.u32 %s1312_s7, 4  ;;  %s1246_s10 = int_to_ptr.vmem [resolvable:$false] %s1245_s10 }
  0x25   : > { %s1247_s11 = scalar_lea.vmem %s1246_s10, 256  ;;  %p1248_p3 = scmp.lt.s32.totalorder %s231_s29, %s1246_s10 }
  0x26   : > { %p1244_p2 = pneg %p1243_p0  ;;  %p1249_p6 = scmp.lt.s32.totalorder %s1247_s11, %s1240_s9 }
  0x28   : > { %p1250_p9 = por %p1249_p6, %p1248_p3 }
  0x2a   : > { %p1251_p10 = pnand %p1250_p9, %p1244_p2 }
  0x2c   : > { %1254 = shalt.err (!%p1251_p10)
}
  0x2d   : > { %1140 = dma.hbm_to_vmem [thread:$0]  (!%p1425_p7), %s228_s24, 128, %s231_s29, %s219_s8  }
  0x2e   : > { %249 = sbr.rel (%p1388_p5) target bundleno = 807 (0x327), region = 36  ;;  %s251_s12 = sand.u32 (!%p1388_p5), 1, %s1293_s19  }
  0x2f   : > { %s1022_s13 = sshll.u32 (!%p1388_p5), %s251_s12, 3  ;;  %s252_s14 = scalar_lea.sflag (!%p1388_p5), [#allocation3], %s251_s12 }
  0x30   : > { %s255_s16 = scalar_lea.vmem (!%p1388_p5), [#allocation2], %s1022_s13 }
  0x33   : > { %1280 = dma.done.wait (%p1384_p4), %s252_s14, 128  }
  0x34   : > { %1282 = vsyncadd (%p1384_p4), %s252_s14, 4294967168 }
  0x35   : > { %1284 = dma.done.wait (%p1376_p1), [#allocation5], 16  }
  0x36   : > { %1286 = vsyncadd (%p1376_p1), [#allocation5], 4294967280  ;;  %v1313_v0 = vmov 0.0   ;;  %vm1314_vm0 = vmmov 0   ;;  %vm333_vm1 = vcmask 261120   ;;  %v325_v1 = vld [vmem:[%s1559_s1 + $0x18] sm:$0xff]  ;;  %v837_v57 = vlaneseq }
  0x37   : > { %1059 = vmatprep.subr.mxu0 %v1313_v0  ;;  %1070 = vmatprep.subr.mxu1 %v1313_v0  ;;  %v324_v2 = vld [vmem:[%s1559_s1 + $0x10] sm:$0xff]  ;;  %v323_v3 = vld [vmem:[%s1559_s1 + $0x8] sm:$0xff]  ;;  %v1459_v4 = vand.u32 4294901760, %v325_v1  ;;  %v322_v7 = vld [vmem:[%s1559_s1] sm:$0xff]  ;;  %v1315_v32 = vmov 0   ;;  %p301_p1 = scmp.lt.s32.totalorder %s1301_s21, 1 }
  0x38   : > { %1067 = vmatprep.mubr.msk.f32.mxu0 %vm1314_vm0, %v1313_v0  ;;  %1078 = vmatprep.mubr.msk.f32.mxu1 %vm1314_vm0, %v1313_v0  ;;  %v1461_v5 = vand.u32 4294901760, %v324_v2  ;;  %v1463_v6 = vand.u32 4294901760, %v323_v3  ;;  %v321_v8 = vld [vmem:[%s255_s16] sm:$0x7f]  ;;  %v1468_v9 = vand.u32 4294901760, %v322_v7  ;;  %vm824_vm2 = vcmask 1046528  }
  0x39   : > { %v335_v10 = vsel %vm333_vm1, %v321_v8, 0  ;;  %1060 = vmatpush3.msra.mxu0 %v1459_v4  ;;  %v442_v11 = vsub.f32 %v325_v1, %v1459_v4  ;;  %1196 = vset.pattern.permute.xlu0 %v1315_v32  ;;  %v1026_v36 = vld [vmem:[#allocation4] ss:$0 sm:$0xff]  ;;  %s1577_s21 = smov (!%p301_p1, %s1301_s21), 1  ;;  %v838_v58 = vand.u32 127, %v837_v57  ;;  %v849_v1 = vshrl.u32 %v837_v57, 7 }
  0x3a   : > { %v1472_v12 = vand.u32 4294901760, %v335_v10  ;;  %v449_v13 = vsub.f32 %v324_v2, %v1461_v5  ;;  %v456_v14 = vsub.f32 %v323_v3, %v1463_v6  ;;  %1061 = vmatprep.subr.mxu0 %v1313_v0  ;;  %v463_v15 = vsub.f32 %v322_v7, %v1468_v9  ;;  %s1024_s30 = sshll.u32 %s1577_s21, 3  ;;  %s320_s16 = scalar_lea.vmem %s1563_s5, %s1577_s21 }
  0x3b   : > { %1062 = vmatpush3.msra.mxu0 %v1461_v5  ;;  %v443_v16 = vand.u32 4294901760, %v442_v11  ;;  %s314_s7 = scalar_lea.vmem %s1562_s4, %s1024_s30  ;;  %s307_s12 = scalar_lea.vmem %s1561_s3, %s1024_s30  ;;  %vm852_vm5 = vcmp.lt.s32.totalorder %v849_v1, 7  ;;  %vm857_vm7 = vcmask 6144  }
  0x3c   : > { %v407_v17 = vsub.f32 %v335_v10, %v1472_v12  ;;  %v450_v18 = vand.u32 4294901760, %v449_v13  ;;  %v457_v19 = vand.u32 4294901760, %v456_v14  ;;  %1063 = vmatprep.subr.mxu0 %v1313_v0  ;;  %v464_v20 = vand.u32 4294901760, %v463_v15  ;;  %v823_v53 = vld [vmem:[%s307_s12] sm:$0x7f] }
  0x3d   : > { %1064 = vmatpush3.msra.mxu0 %v1463_v6  ;;  %v444_v21 = vsub.f32 %v442_v11, %v443_v16  ;;  %vm853_vm4 = vcmp.ge.s32.totalorder %v823_v53, 0 }
  0x3e   : > { %v408_v22 = vand.u32 4294901760, %v407_v17  ;;  %v451_v23 = vsub.f32 %v449_v13, %v450_v18  ;;  %v458_v24 = vsub.f32 %v456_v14, %v457_v19  ;;  %1065 = vmatprep.subr.mxu0 %v1313_v0  ;;  %v465_v28 = vsub.f32 %v463_v15, %v464_v20  ;;  %vm854_vm6 = vmand %vm852_vm5, %vm853_vm4 }
  0x3f   : > { %1066 = vmatpush3.msra.mxu0 %v1468_v9  ;;  %v445_v25 = vand.u32 4294901760, %v444_v21 }
  0x40   : > { %v409_v26 = vsub.f32 %v407_v17, %v408_v22  ;;  %v452_v27 = vand.u32 4294901760, %v451_v23  ;;  %1081 = vmatprep.subr.mxu0 %v1313_v0  ;;  %v459_v30 = vand.u32 4294901760, %v458_v24  ;;  %v466_v31 = vand.u32 4294901760, %v465_v28 }
  0x41   : > { %1071 = vmatpush3.msra.mxu1 %v445_v25 }
  0x42   : > { %v410_v29 = vand.u32 4294901760, %v409_v26  ;;  %1072 = vmatprep.subr.mxu1 %v1313_v0 }
  0x43   : > { %1073 = vmatpush3.msra.mxu1 %v452_v27 }
  0x44   : > { %1068 = vmatmul.mubr.f32.vlgmr.msra.gmra.mxu0 %v410_v29  ;;  %1074 = vmatprep.subr.mxu1 %v1313_v0 }
  0x45   : > { %1082 = vmatpush3.msra.mxu0 %v442_v11  ;;  %1075 = vmatpush3.msra.mxu1 %v459_v30 }
  0x46   : > { %1083 = vmatprep.subr.mxu0 %v1313_v0  ;;  %1076 = vmatprep.subr.mxu1 %v1313_v0 }
  0x47   : > { %1084 = vmatpush3.msra.mxu0 %v449_v13  ;;  %1077 = vmatpush3.msra.mxu1 %v466_v31 }
  0x48   : > { %1085 = vmatprep.subr.mxu0 %v1313_v0  ;;  %1079 = vmatmul.mubr.f32.vlgmr.msra.gmra.mxu1 %v1472_v12 }
  0x49   : > { %1086 = vmatpush3.msra.mxu0 %v456_v14  ;;  %1092 = vmatprep.subr.mxu1 %v1313_v0 }
  0x4a   : > { %1087 = vmatprep.subr.mxu0 %v1313_v0  ;;  %1093 = vmatpush3.msra.mxu1 %v1459_v4 }
  0x4b   : > { %1088 = vmatpush3.msra.mxu0 %v463_v15  ;;  %1089 = vmatprep.mubr.msk.f32.mxu0 %vm1314_vm0, %v1313_v0 }
  0x4c   : > { %1094 = vmatprep.subr.mxu1 %v1313_v0  ;;  %1103 = vmatprep.subr.mxu0 %v1313_v0 }
  0x4d   : > { %1090 = vmatmul.mubr.f32.vlgmr.msra.gmra.mxu0 %v407_v17  ;;  %1095 = vmatpush3.msra.mxu1 %v1461_v5 }
  0x4e   : > { %1104 = vmatpush3.msra.mxu0 %v443_v16  ;;  %1096 = vmatprep.subr.mxu1 %v1313_v0 }
  0x4f   : > { %1105 = vmatprep.subr.mxu0 %v1313_v0  ;;  %1097 = vmatpush3.msra.mxu1 %v1463_v6 }
  0x50   : > { %1106 = vmatpush3.msra.mxu0 %v450_v18  ;;  %1098 = vmatprep.subr.mxu1 %v1313_v0 }
  0x51   : > { %1107 = vmatprep.subr.mxu0 %v1313_v0  ;;  %1099 = vmatpush3.msra.mxu1 %v1468_v9 }
  0x52   : > { %1100 = vmatprep.mubr.msk.f32.mxu1 %vm1314_vm0, %v1313_v0  ;;  %1108 = vmatpush3.msra.mxu0 %v457_v19 }
  0x53   : > { %1101 = vmatmul.mubr.f32.vlgmr.msra.gmra.mxu1 %v408_v22  ;;  %1109 = vmatprep.subr.mxu0 %v1313_v0 }
  0x54   : > { %1114 = vmatprep.subr.mxu1 %v1313_v0  ;;  %1110 = vmatpush3.msra.mxu0 %v464_v20 }
  0x55   : > { %1111 = vmatprep.mubr.msk.f32.mxu0 %vm1314_vm0, %v1313_v0  ;;  %1115 = vmatpush3.msra.mxu1 %v1459_v4 }
  0x56   : > { %1112 = vmatmul.mubr.f32.vlgmr.msra.gmra.mxu0 %v1472_v12  ;;  %1116 = vmatprep.subr.mxu1 %v1313_v0 }
  0x57   : > { %1122 = vmatprep.mubr.msk.f32.mxu1 %vm1314_vm0, %v1313_v0  ;;  %1117 = vmatpush3.msra.mxu1 %v1461_v5 }
  0x58   : > { %1118 = vmatprep.subr.mxu1 %v1313_v0 }
  0x59   : > { %1119 = vmatpush3.msra.mxu1 %v1463_v6 }
  0x5a   : > { %1120 = vmatprep.subr.mxu1 %v1313_v0 }
  0x5b   : > { %1121 = vmatpush3.msra.mxu1 %v1468_v9 }
  0x5c   : > { %1123 = vmatmul.mubr.f32.vlgmr.msra.gmra.mxu1 %v1472_v12 }
 0x104   : > { %v412_v33 = vpop.f32.mrf.mxu0 }
 0x105   : > { %v413_v39 = vadd.f32 %v1026_v36, %v412_v33 }
 0x106   : > { %v1069_v34 = vpop.f32.mrf.mxu0 }
 0x108   : > { %v503_v35 = vpop.f32.mrf.mxu1 }
 0x109   : > { %v504_v41 = vadd.f32 %v503_v35, %v413_v39 }
 0x10a   : > { %v1080_v37 = vpop.f32.mrf.mxu1 }
 0x10d   : > { %v583_v38 = vpop.f32.mrf.mxu0 }
 0x10e   : > { %v584_v44 = vadd.f32 %v583_v38, %v504_v41 }
 0x10f   : > { %v1091_v40 = vpop.f32.mrf.mxu0 }
 0x113   : > { %v660_v42 = vpop.f32.mrf.mxu1 }
 0x114   : > { %v661_v46 = vadd.f32 %v660_v42, %v584_v44 }
 0x115   : > { %v1102_v43 = vpop.f32.mrf.mxu1 }
 0x116   : > { %v743_v45 = vpop.f32.mrf.mxu0 }
 0x117   : > { %v744_v48 = vadd.f32 %v743_v45, %v661_v46 }
 0x118   : > { %v1113_v47 = vpop.f32.mrf.mxu0 }
 0x11c   : > { %v818_v49 = vpop.f32.mrf.mxu1 }
 0x11d   : > { %v819_v50 = vadd.f32 %v818_v49, %v744_v48 }
 0x11e   : > { %v1124_v51 = vpop.f32.mrf.mxu1 }
 0x11f   : > { %v825_v52 = vsel %vm824_vm2, %v819_v50, -inf  ;;  %822 = vst [vmem:[%s314_s7] sm:$0x7f] %v819_v50 }
 0x120   : > { %826 = vmax.xlane.f32.xlu0 %v825_v52 }
 0x136   : > { %840 = vperm.xlu0 %1196, %v823_v53  }
 0x1a9   : > { %v827_v54 = vpop.xlane.xlu0 %826 }
 0x1aa   : > { %v828_v55 = vsub.f32 %v819_v50, %v827_v54 }
 0x1ac   : > { %v829_v56 = vmul.f32 1.442695, %v828_v55 }
 0x1ae   : > { %1197 = vpow2.f32 %v829_v56 }
 0x1b1   : > { %v841_v59 = vpop.permute.xlu0 %840 }
 0x1b2   : > { %vm842_vm3 = vcmp.eq.s32.totalorder %v838_v58, %v841_v59 }
 0x1b3   : > { %v843_v62 = vsel %vm842_vm3, %v819_v50, 0.0 }
 0x1b4   : > { %v844_v63 = vsel %vm824_vm2, %v843_v62, 0.0 }
 0x1bb   : > { %v1198_v60 = vpop.eup %1197 }
 0x1bc   : > { %v831_v61 = vsel %vm824_vm2, %v1198_v60, 0.0 }
 0x1bd   : > { %832 = vadd.xlane.f32.xlu1 %v831_v61 }
 0x1c1   : > { %845 = vadd.xlane.f32.xlu1 %v844_v63 }
 0x246   : > { %v833_v0 = vpop.xlane.xlu1 %832 }
 0x247   : > { %1199 = vlog2.f32 %v833_v0 }
 0x24a   : > { %v846_v5 = vpop.xlane.xlu1 %845 }
 0x254   : > { %v1200_v2 = vpop.eup %1199 }
 0x255   : > { %v835_v3 = vmul.f32 0.6931472, %v1200_v2 }
 0x257   : > { %v836_v4 = vadd.f32 %v835_v3, %v827_v54 }
 0x259   : > { %v855_v6 = vsub.f32 %v836_v4, %v846_v5 }
 0x25b   : > { %v856_v7 = vsel %vm854_vm6, %v855_v6, 0.0 }
 0x25c   : > { %v858_v8 = vsel %vm857_vm7, %v856_v7, 0.0 }
 0x25d   : > { %859 = vadd.xlane.f32.xlu1 %v858_v8 }
 0x2e6   : > { %v860_v9 = vpop.xlane.xlu1 %859 }
 0x2e7   : > { %v861_v10 = vrot.slane %v860_v9, 4 }
 0x2e9   : > { %v862_v11 = vadd.f32 %v861_v10, %v860_v9 }
 0x2eb   : > { %v863_v12 = vrot.slane %v862_v11, 2 }
 0x2ed   : > { %v864_v13 = vadd.f32 %v863_v12, %v862_v11 }
 0x2ef   : > { %v865_v14 = vrot.slane %v864_v13, 1 }
 0x2f1   : > { %v866_v15 = vadd.f32 %v865_v14, %v864_v13 }
 0x2f3   : > { %1125 = vpush %v866_v15 }
 0x324   : > { %s1126_s26 = spop %1125 }
 0x325   : > { %v868_v16 = vstv %s1126_s26 }
 0x326   : > { %869 = vst [vmem:[%s320_s16] sm:$0x1] %v868_v16 }
 0x327 PF: > { %s20_s23 = sadd.s32 1, %s1309_s23   ;;  %s1569_s18 = smov %s1293_s19 }
 0x328   : > { %p17_p4 = scmp.ge.s32.totalorder %s20_s23, 4   ;;  %s1570_s19 = smov %s1297_s20 }
 0x329   : > { %s1571_s20 = smov %s1420_s15  ;;  %s1572_s21 = smov %s1305_s22 }
 0x32a   : > { %s1573_s22 = smov %s1575_s6  ;;  %19 = sbr.rel (!%p17_p4) target bundleno = 5 (0x5), region = 95 }
 0x32f   :  { %913 = vsyncpa [#allocation3], 1 }
 0x330   :  { %915 = vsyncpa [#allocation3 + $0x1], 1 }
 0x331   :  { %916 = vsyncpa [#allocation5], 1 }

</bundles_post_ra>
